<compile_context>
chip_gen: v7x
topology: tpu7x:2x2x1
jax: 0.10.0
libtpu: 0.0.40
codegen_flags: <defaults>
</compile_context>

<pallas_src>
import jax
import jax.numpy as jnp
import numpy as np
from jax import lax
from jax.experimental import pallas as pl
from jax.experimental.pallas import tpu as pltpu


def lstm_linear_kernel(x_ref, wih_ref, whh_ref, b_ref, wlin_ref, blin_ref,
                       h0_ref, c0_ref,
                       out_ref, hn_ref, cn_ref,
                       zx_ref, hs_ref):
    T, B, I = x_ref.shape
    H = h0_ref.shape[-1]
    O = out_ref.shape[-1]

    # --- Hoisted, non-recurrent input projection: one big matmul + bias. ---
    x_flat = x_ref[...].reshape(T * B, I)
    zx = jnp.dot(x_flat, wih_ref[...], preferred_element_type=jnp.float32) + b_ref[...]
    zx_ref[...] = zx.reshape(T, B, 4 * H)

    # Hoist the recurrent weight out of the loop (stays in vregs/VMEM).
    whh = whh_ref[...]

    def step(t, carry):
        h, c = carry
        # Single fused gate matmul per step: (B, H) @ (H, 4H) -> (B, 4H).
        z = zx_ref[t] + jnp.dot(h, whh, preferred_element_type=jnp.float32)
        i_g = jax.nn.sigmoid(z[:, 0 * H:1 * H])
        f_g = jax.nn.sigmoid(z[:, 1 * H:2 * H])
        g_g = jnp.tanh(z[:, 2 * H:3 * H])
        o_g = jax.nn.sigmoid(z[:, 3 * H:4 * H])
        c_new = f_g * c + i_g * g_g
        h_new = o_g * jnp.tanh(c_new)
        hs_ref[t] = h_new
        return (h_new, c_new)

    # T is a small compile-time constant: fully unroll the recurrence.
    h_f, c_f = lax.fori_loop(0, T, step, (h0_ref[...], c0_ref[...]), unroll=True)
    hn_ref[...] = h_f
    cn_ref[...] = c_f

    # --- Batched output Linear: one matmul + one bulk store. ---
    hs_flat = hs_ref[...].reshape(T * B, H)
    out = (jnp.dot(hs_flat, wlin_ref[...], preferred_element_type=jnp.float32)
           + blin_ref[...])
    out_ref[...] = out.reshape(T, B, O)


@jax.jit
def lstm_model_forward(x, hidden, params):
    """Mirrors LSTMModel.forward(x, hidden) -> (out, (h_n, c_n))."""
    h0_full, c0_full = hidden                 # (1, B, H) each (num_layers=1)
    B, T, I = x.shape
    H = h0_full.shape[-1]
    O = params["wlin"].shape[1]

    x_tm = jnp.transpose(x, (1, 0, 2))        # (T, B, I) time-major for the kernel
    h0 = h0_full[0]
    c0 = c0_full[0]

    vmem = pl.BlockSpec(memory_space=pltpu.MemorySpace.VMEM)
    out_tm, hn, cn = pl.pallas_call(
        lstm_linear_kernel,
        out_shape=(
            jax.ShapeDtypeStruct((T, B, O), jnp.float32),
            jax.ShapeDtypeStruct((B, H), jnp.float32),
            jax.ShapeDtypeStruct((B, H), jnp.float32),
        ),
        in_specs=[vmem] * 8,
        out_specs=(vmem, vmem, vmem),
        scratch_shapes=[
            pltpu.VMEM((T, B, 4 * H), jnp.float32),   # hoisted input projection
            pltpu.VMEM((T, B, H), jnp.float32),       # hidden-state accumulator
        ],
    )(x_tm, params["wih"], params["whh"], params["b"],
      params["wlin"], params["blin"], h0, c0)

    out = jnp.transpose(out_tm, (1, 0, 2))    # back to (B, T, O)
    return out, (hn[None], cn[None])


def init_params(key, input_size, hidden_size, output_size):
    """Deterministic init; same shapes as nn.LSTM / nn.Linear parameters."""
    H, I, O = hidden_size, input_size, output_size
    k = 1.0 / np.sqrt(H)
    keys = jax.random.split(key, 6)
    # PyTorch-layout raw parameters (rows are gate blocks [i; f; g; o]).
    w_ih = jax.random.uniform(keys[0], (4 * H, I), jnp.float32, -k, k)
    w_hh = jax.random.uniform(keys[1], (4 * H, H), jnp.float32, -k, k)
    b_ih = jax.random.uniform(keys[2], (4 * H,), jnp.float32, -k, k)
    b_hh = jax.random.uniform(keys[3], (4 * H,), jnp.float32, -k, k)
    w_lin = jax.random.uniform(keys[4], (O, H), jnp.float32, -k, k)
    b_lin = jax.random.uniform(keys[5], (O,), jnp.float32, -k, k)

    # Kernel-friendly fused layout: (I, 4H)/(H, 4H) with gates [i|f|g|o] as columns.
    params = {
        "wih": w_ih.T,                         # (I, 4H)
        "whh": w_hh.T,                         # (H, 4H)
        "b": (b_ih + b_hh).reshape(1, 4 * H),  # (1, 4H)
        "wlin": w_lin.T,                       # (H, O)
        "blin": b_lin.reshape(1, O),           # (1, O)
    }
    raw = (w_ih, w_hh, b_ih, b_hh, w_lin, b_lin)
    return params, raw


def lstm_model_ref(x, hidden, raw):
    """Pure-JAX reference with PyTorch nn.LSTM gate semantics (i, f, g, o)."""
    w_ih, w_hh, b_ih, b_hh, w_lin, b_lin = raw
    h0, c0 = hidden[0][0], hidden[1][0]
    H = h0.shape[-1]

    def step(carry, x_t):
        h, c = carry
        gates = x_t @ w_ih.T + b_ih + h @ w_hh.T + b_hh
        i = jax.nn.sigmoid(gates[:, 0:H])
        f = jax.nn.sigmoid(gates[:, H:2 * H])
        g = jnp.tanh(gates[:, 2 * H:3 * H])
        o = jax.nn.sigmoid(gates[:, 3 * H:4 * H])
        c = f * c + i * g
        h = o * jnp.tanh(c)
        return (h, c), h

    (h_f, c_f), hs = lax.scan(step, (h0, c0), jnp.transpose(x, (1, 0, 2)))
    out = jnp.einsum("tbh,oh->tbo", hs, w_lin) + b_lin
    return jnp.transpose(out, (1, 0, 2)), (h_f[None], c_f[None])


if __name__ == "__main__":
    B, T, I, H, O = 2, 8, 16, 32, 8   # 4H = 128 -> lane-dense fused gate dim

    key = jax.random.PRNGKey(0)
    k_p, k_x, k_h, k_c = jax.random.split(key, 4)
    params, raw = init_params(k_p, I, H, O)

    x = jax.random.normal(k_x, (B, T, I), jnp.float32)
    h0 = jax.random.normal(k_h, (1, B, H), jnp.float32)
    c0 = jax.random.normal(k_c, (1, B, H), jnp.float32)

    out, (hn, cn) = lstm_model_forward(x, (h0, c0), params)
    jax.block_until_ready(out)
    jax.block_until_ready(hn)
    jax.block_until_ready(cn)

    # Correctness check against a plain-JAX reference of the PyTorch semantics.
    out_r, (hn_r, cn_r) = lstm_model_ref(x, (h0, c0), raw)
    np.testing.assert_allclose(np.asarray(out), np.asarray(out_r), rtol=1e-4, atol=1e-4)
    np.testing.assert_allclose(np.asarray(hn), np.asarray(hn_r), rtol=1e-4, atol=1e-4)
    np.testing.assert_allclose(np.asarray(cn), np.asarray(cn_r), rtol=1e-4, atol=1e-4)

    print("KERNEL_OK")
</pallas_src>

<mosaic_0001>
module attributes {stable_mosaic.version = 11 : i64} {
  func.func @lstm_linear_kernel(%arg0: memref<8x2x16xf32, #tpu.memory_space<vmem>>, %arg1: memref<16x128xf32, #tpu.memory_space<vmem>>, %arg2: memref<32x128xf32, #tpu.memory_space<vmem>>, %arg3: memref<1x128xf32, #tpu.memory_space<vmem>>, %arg4: memref<32x8xf32, #tpu.memory_space<vmem>>, %arg5: memref<1x8xf32, #tpu.memory_space<vmem>>, %arg6: memref<2x32xf32, #tpu.memory_space<vmem>>, %arg7: memref<2x32xf32, #tpu.memory_space<vmem>>, %arg8: memref<8x2x8xf32, #tpu.memory_space<vmem>>, %arg9: memref<2x32xf32, #tpu.memory_space<vmem>>, %arg10: memref<2x32xf32, #tpu.memory_space<vmem>>, %arg11: memref<8x2x128xf32, #tpu.memory_space<vmem>>, %arg12: memref<8x2x32xf32, #tpu.memory_space<vmem>>) attributes {dimension_semantics = [], scalar_prefetch = 0 : i64, scratch_operands = 2 : i64, tpu.core_type = #tpu.core_type<tc>} {
    %c0 = arith.constant 0 : index
    %c0_0 = arith.constant 0 : index
    %c0_1 = arith.constant 0 : index
    %0 = vector.load %arg0[%c0, %c0_0, %c0_1] : memref<8x2x16xf32, #tpu.memory_space<vmem>>, vector<8x2x16xf32>
    %1 = vector.shape_cast %0 : vector<8x2x16xf32> to vector<16x16xf32>
    %c0_2 = arith.constant 0 : index
    %c0_3 = arith.constant 0 : index
    %2 = vector.load %arg1[%c0_2, %c0_3] : memref<16x128xf32, #tpu.memory_space<vmem>>, vector<16x128xf32>
    %cst = arith.constant dense<0.000000e+00> : vector<16x128xf32>
    %3 = tpu.matmul %1, %2, %cst {dimension_numbers = #tpu.dot_dimension_numbers<[1], [0], [0], [1], [0, 0, 1, 1], [], []>} : vector<16x16xf32>, vector<16x128xf32>, vector<16x128xf32> -> vector<16x128xf32>
    %c0_4 = arith.constant 0 : index
    %c0_5 = arith.constant 0 : index
    %4 = vector.load %arg3[%c0_4, %c0_5] : memref<1x128xf32, #tpu.memory_space<vmem>>, vector<1x128xf32>
    %5 = vector.broadcast %4 : vector<1x128xf32> to vector<16x128xf32>
    %6 = arith.addf %3, %5 : vector<16x128xf32>
    %7 = vector.shape_cast %6 : vector<16x128xf32> to vector<8x2x128xf32>
    %c0_6 = arith.constant 0 : index
    %c0_7 = arith.constant 0 : index
    %c0_8 = arith.constant 0 : index
    %8 = vector.load %arg11[%c0_6, %c0_7, %c0_8] : memref<8x2x128xf32, #tpu.memory_space<vmem>>, vector<8x2x128xf32>
    tpu.vector_store %arg11[%c0_6, %c0_7, %c0_8], %7 {strides = array<i32>} : memref<8x2x128xf32, #tpu.memory_space<vmem>>, vector<8x2x128xf32>,
    %c0_9 = arith.constant 0 : index
    %c0_10 = arith.constant 0 : index
    %9 = vector.load %arg2[%c0_9, %c0_10] : memref<32x128xf32, #tpu.memory_space<vmem>>, vector<32x128xf32>
    %c0_11 = arith.constant 0 : index
    %c0_12 = arith.constant 0 : index
    %10 = vector.load %arg6[%c0_11, %c0_12] : memref<2x32xf32, #tpu.memory_space<vmem>>, vector<2x32xf32>
    %c0_13 = arith.constant 0 : index
    %c0_14 = arith.constant 0 : index
    %11 = vector.load %arg7[%c0_13, %c0_14] : memref<2x32xf32, #tpu.memory_space<vmem>>, vector<2x32xf32>
    %c0_i32 = arith.constant 0 : i32
    %12 = arith.index_cast %c0_i32 : i32 to index
    %c0_15 = arith.constant 0 : index
    %c0_16 = arith.constant 0 : index
    %13 = vector.load %arg11[%12, %c0_15, %c0_16] : memref<8x2x128xf32, #tpu.memory_space<vmem>>, vector<1x2x128xf32>
    %14 = vector.shape_cast %13 : vector<1x2x128xf32> to vector<2x128xf32>
    %cst_17 = arith.constant dense<0.000000e+00> : vector<2x128xf32>
    %15 = tpu.matmul %10, %9, %cst_17 {dimension_numbers = #tpu.dot_dimension_numbers<[1], [0], [0], [1], [0, 0, 1, 1], [], []>} : vector<2x32xf32>, vector<32x128xf32>, vector<2x128xf32> -> vector<2x128xf32>
    %16 = arith.addf %14, %15 : vector<2x128xf32>
    %17 = vector.extract_strided_slice %16 {offsets = [0, 0], sizes = [2, 32], strides = [1, 1]} : vector<2x128xf32> to vector<2x32xf32>
    %18 = arith.negf %17 : vector<2x32xf32>
    %19 = math.exp %18 : vector<2x32xf32>
    %cst_18 = arith.constant 1.000000e+00 : f32
    %20 = vector.broadcast %cst_18 : f32 to vector<2x32xf32>
    %21 = arith.addf %20, %19 : vector<2x32xf32>
    %22 = arith.divf %20, %21 : vector<2x32xf32>
    %23 = vector.extract_strided_slice %16 {offsets = [0, 32], sizes = [2, 32], strides = [1, 1]} : vector<2x128xf32> to vector<2x32xf32>
    %24 = arith.negf %23 : vector<2x32xf32>
    %25 = math.exp %24 : vector<2x32xf32>
    %cst_19 = arith.constant 1.000000e+00 : f32
    %26 = vector.broadcast %cst_19 : f32 to vector<2x32xf32>
    %27 = arith.addf %26, %25 : vector<2x32xf32>
    %28 = arith.divf %26, %27 : vector<2x32xf32>
    %29 = vector.extract_strided_slice %16 {offsets = [0, 64], sizes = [2, 32], strides = [1, 1]} : vector<2x128xf32> to vector<2x32xf32>
    %30 = math.tanh %29 : vector<2x32xf32>
    %31 = vector.extract_strided_slice %16 {offsets = [0, 96], sizes = [2, 32], strides = [1, 1]} : vector<2x128xf32> to vector<2x32xf32>
    %32 = arith.negf %31 : vector<2x32xf32>
    %33 = math.exp %32 : vector<2x32xf32>
    %cst_20 = arith.constant 1.000000e+00 : f32
    %34 = vector.broadcast %cst_20 : f32 to vector<2x32xf32>
    %35 = arith.addf %34, %33 : vector<2x32xf32>
    %36 = arith.divf %34, %35 : vector<2x32xf32>
    %37 = arith.mulf %28, %11 : vector<2x32xf32>
    %38 = arith.mulf %22, %30 : vector<2x32xf32>
    %39 = arith.addf %37, %38 : vector<2x32xf32>
    %40 = math.tanh %39 : vector<2x32xf32>
    %41 = arith.mulf %36, %40 : vector<2x32xf32>
    %42 = arith.index_cast %c0_i32 : i32 to index
    %c0_21 = arith.constant 0 : index
    %c0_22 = arith.constant 0 : index
    %43 = vector.load %arg12[%42, %c0_21, %c0_22] : memref<8x2x32xf32, #tpu.memory_space<vmem>>, vector<1x2x32xf32>
    %44 = vector.shape_cast %43 : vector<1x2x32xf32> to vector<2x32xf32>
    %45 = vector.shape_cast %41 : vector<2x32xf32> to vector<1x2x32xf32>
    tpu.vector_store %arg12[%42, %c0_21, %c0_22], %45 {strides = array<i32>} : memref<8x2x32xf32, #tpu.memory_space<vmem>>, vector<1x2x32xf32>,
    %c1_i32 = arith.constant 1 : i32
    %46 = arith.index_cast %c1_i32 : i32 to index
    %c0_23 = arith.constant 0 : index
    %c0_24 = arith.constant 0 : index
    %47 = vector.load %arg11[%46, %c0_23, %c0_24] : memref<8x2x128xf32, #tpu.memory_space<vmem>>, vector<1x2x128xf32>
    %48 = vector.shape_cast %47 : vector<1x2x128xf32> to vector<2x128xf32>
    %cst_25 = arith.constant dense<0.000000e+00> : vector<2x128xf32>
    %49 = tpu.matmul %41, %9, %cst_25 {dimension_numbers = #tpu.dot_dimension_numbers<[1], [0], [0], [1], [0, 0, 1, 1], [], []>} : vector<2x32xf32>, vector<32x128xf32>, vector<2x128xf32> -> vector<2x128xf32>
    %50 = arith.addf %48, %49 : vector<2x128xf32>
    %51 = vector.extract_strided_slice %50 {offsets = [0, 0], sizes = [2, 32], strides = [1, 1]} : vector<2x128xf32> to vector<2x32xf32>
    %52 = arith.negf %51 : vector<2x32xf32>
    %53 = math.exp %52 : vector<2x32xf32>
    %cst_26 = arith.constant 1.000000e+00 : f32
    %54 = vector.broadcast %cst_26 : f32 to vector<2x32xf32>
    %55 = arith.addf %54, %53 : vector<2x32xf32>
    %56 = arith.divf %54, %55 : vector<2x32xf32>
    %57 = vector.extract_strided_slice %50 {offsets = [0, 32], sizes = [2, 32], strides = [1, 1]} : vector<2x128xf32> to vector<2x32xf32>
    %58 = arith.negf %57 : vector<2x32xf32>
    %59 = math.exp %58 : vector<2x32xf32>
    %cst_27 = arith.constant 1.000000e+00 : f32
    %60 = vector.broadcast %cst_27 : f32 to vector<2x32xf32>
    %61 = arith.addf %60, %59 : vector<2x32xf32>
    %62 = arith.divf %60, %61 : vector<2x32xf32>
    %63 = vector.extract_strided_slice %50 {offsets = [0, 64], sizes = [2, 32], strides = [1, 1]} : vector<2x128xf32> to vector<2x32xf32>
    %64 = math.tanh %63 : vector<2x32xf32>
    %65 = vector.extract_strided_slice %50 {offsets = [0, 96], sizes = [2, 32], strides = [1, 1]} : vector<2x128xf32> to vector<2x32xf32>
    %66 = arith.negf %65 : vector<2x32xf32>
    %67 = math.exp %66 : vector<2x32xf32>
    %cst_28 = arith.constant 1.000000e+00 : f32
    %68 = vector.broadcast %cst_28 : f32 to vector<2x32xf32>
    %69 = arith.addf %68, %67 : vector<2x32xf32>
    %70 = arith.divf %68, %69 : vector<2x32xf32>
    %71 = arith.mulf %62, %39 : vector<2x32xf32>
    %72 = arith.mulf %56, %64 : vector<2x32xf32>
    %73 = arith.addf %71, %72 : vector<2x32xf32>
    %74 = math.tanh %73 : vector<2x32xf32>
    %75 = arith.mulf %70, %74 : vector<2x32xf32>
    %76 = arith.index_cast %c1_i32 : i32 to index
    %c0_29 = arith.constant 0 : index
    %c0_30 = arith.constant 0 : index
    %77 = vector.load %arg12[%76, %c0_29, %c0_30] : memref<8x2x32xf32, #tpu.memory_space<vmem>>, vector<1x2x32xf32>
    %78 = vector.shape_cast %77 : vector<1x2x32xf32> to vector<2x32xf32>
    %79 = vector.shape_cast %75 : vector<2x32xf32> to vector<1x2x32xf32>
    tpu.vector_store %arg12[%76, %c0_29, %c0_30], %79 {strides = array<i32>} : memref<8x2x32xf32, #tpu.memory_space<vmem>>, vector<1x2x32xf32>,
    %c2_i32 = arith.constant 2 : i32
    %80 = arith.index_cast %c2_i32 : i32 to index
    %c0_31 = arith.constant 0 : index
    %c0_32 = arith.constant 0 : index
    %81 = vector.load %arg11[%80, %c0_31, %c0_32] : memref<8x2x128xf32, #tpu.memory_space<vmem>>, vector<1x2x128xf32>
    %82 = vector.shape_cast %81 : vector<1x2x128xf32> to vector<2x128xf32>
    %cst_33 = arith.constant dense<0.000000e+00> : vector<2x128xf32>
    %83 = tpu.matmul %75, %9, %cst_33 {dimension_numbers = #tpu.dot_dimension_numbers<[1], [0], [0], [1], [0, 0, 1, 1], [], []>} : vector<2x32xf32>, vector<32x128xf32>, vector<2x128xf32> -> vector<2x128xf32>
    %84 = arith.addf %82, %83 : vector<2x128xf32>
    %85 = vector.extract_strided_slice %84 {offsets = [0, 0], sizes = [2, 32], strides = [1, 1]} : vector<2x128xf32> to vector<2x32xf32>
    %86 = arith.negf %85 : vector<2x32xf32>
    %87 = math.exp %86 : vector<2x32xf32>
    %cst_34 = arith.constant 1.000000e+00 : f32
    %88 = vector.broadcast %cst_34 : f32 to vector<2x32xf32>
    %89 = arith.addf %88, %87 : vector<2x32xf32>
    %90 = arith.divf %88, %89 : vector<2x32xf32>
    %91 = vector.extract_strided_slice %84 {offsets = [0, 32], sizes = [2, 32], strides = [1, 1]} : vector<2x128xf32> to vector<2x32xf32>
    %92 = arith.negf %91 : vector<2x32xf32>
    %93 = math.exp %92 : vector<2x32xf32>
    %cst_35 = arith.constant 1.000000e+00 : f32
    %94 = vector.broadcast %cst_35 : f32 to vector<2x32xf32>
    %95 = arith.addf %94, %93 : vector<2x32xf32>
    %96 = arith.divf %94, %95 : vector<2x32xf32>
    %97 = vector.extract_strided_slice %84 {offsets = [0, 64], sizes = [2, 32], strides = [1, 1]} : vector<2x128xf32> to vector<2x32xf32>
    %98 = math.tanh %97 : vector<2x32xf32>
    %99 = vector.extract_strided_slice %84 {offsets = [0, 96], sizes = [2, 32], strides = [1, 1]} : vector<2x128xf32> to vector<2x32xf32>
    %100 = arith.negf %99 : vector<2x32xf32>
    %101 = math.exp %100 : vector<2x32xf32>
    %cst_36 = arith.constant 1.000000e+00 : f32
    %102 = vector.broadcast %cst_36 : f32 to vector<2x32xf32>
    %103 = arith.addf %102, %101 : vector<2x32xf32>
    %104 = arith.divf %102, %103 : vector<2x32xf32>
    %105 = arith.mulf %96, %73 : vector<2x32xf32>
    %106 = arith.mulf %90, %98 : vector<2x32xf32>
    %107 = arith.addf %105, %106 : vector<2x32xf32>
    %108 = math.tanh %107 : vector<2x32xf32>
    %109 = arith.mulf %104, %108 : vector<2x32xf32>
    %110 = arith.index_cast %c2_i32 : i32 to index
    %c0_37 = arith.constant 0 : index
    %c0_38 = arith.constant 0 : index
    %111 = vector.load %arg12[%110, %c0_37, %c0_38] : memref<8x2x32xf32, #tpu.memory_space<vmem>>, vector<1x2x32xf32>
    %112 = vector.shape_cast %111 : vector<1x2x32xf32> to vector<2x32xf32>
    %113 = vector.shape_cast %109 : vector<2x32xf32> to vector<1x2x32xf32>
    tpu.vector_store %arg12[%110, %c0_37, %c0_38], %113 {strides = array<i32>} : memref<8x2x32xf32, #tpu.memory_space<vmem>>, vector<1x2x32xf32>,
    %c3_i32 = arith.constant 3 : i32
    %114 = arith.index_cast %c3_i32 : i32 to index
    %c0_39 = arith.constant 0 : index
    %c0_40 = arith.constant 0 : index
    %115 = vector.load %arg11[%114, %c0_39, %c0_40] : memref<8x2x128xf32, #tpu.memory_space<vmem>>, vector<1x2x128xf32>
    %116 = vector.shape_cast %115 : vector<1x2x128xf32> to vector<2x128xf32>
    %cst_41 = arith.constant dense<0.000000e+00> : vector<2x128xf32>
    %117 = tpu.matmul %109, %9, %cst_41 {dimension_numbers = #tpu.dot_dimension_numbers<[1], [0], [0], [1], [0, 0, 1, 1], [], []>} : vector<2x32xf32>, vector<32x128xf32>, vector<2x128xf32> -> vector<2x128xf32>
    %118 = arith.addf %116, %117 : vector<2x128xf32>
    %119 = vector.extract_strided_slice %118 {offsets = [0, 0], sizes = [2, 32], strides = [1, 1]} : vector<2x128xf32> to vector<2x32xf32>
    %120 = arith.negf %119 : vector<2x32xf32>
    %121 = math.exp %120 : vector<2x32xf32>
    %cst_42 = arith.constant 1.000000e+00 : f32
    %122 = vector.broadcast %cst_42 : f32 to vector<2x32xf32>
    %123 = arith.addf %122, %121 : vector<2x32xf32>
    %124 = arith.divf %122, %123 : vector<2x32xf32>
    %125 = vector.extract_strided_slice %118 {offsets = [0, 32], sizes = [2, 32], strides = [1, 1]} : vector<2x128xf32> to vector<2x32xf32>
    %126 = arith.negf %125 : vector<2x32xf32>
    %127 = math.exp %126 : vector<2x32xf32>
    %cst_43 = arith.constant 1.000000e+00 : f32
    %128 = vector.broadcast %cst_43 : f32 to vector<2x32xf32>
    %129 = arith.addf %128, %127 : vector<2x32xf32>
    %130 = arith.divf %128, %129 : vector<2x32xf32>
    %131 = vector.extract_strided_slice %118 {offsets = [0, 64], sizes = [2, 32], strides = [1, 1]} : vector<2x128xf32> to vector<2x32xf32>
    %132 = math.tanh %131 : vector<2x32xf32>
    %133 = vector.extract_strided_slice %118 {offsets = [0, 96], sizes = [2, 32], strides = [1, 1]} : vector<2x128xf32> to vector<2x32xf32>
    %134 = arith.negf %133 : vector<2x32xf32>
    %135 = math.exp %134 : vector<2x32xf32>
    %cst_44 = arith.constant 1.000000e+00 : f32
    %136 = vector.broadcast %cst_44 : f32 to vector<2x32xf32>
    %137 = arith.addf %136, %135 : vector<2x32xf32>
    %138 = arith.divf %136, %137 : vector<2x32xf32>
    %139 = arith.mulf %130, %107 : vector<2x32xf32>
    %140 = arith.mulf %124, %132 : vector<2x32xf32>
    %141 = arith.addf %139, %140 : vector<2x32xf32>
    %142 = math.tanh %141 : vector<2x32xf32>
    %143 = arith.mulf %138, %142 : vector<2x32xf32>
    %144 = arith.index_cast %c3_i32 : i32 to index
    %c0_45 = arith.constant 0 : index
    %c0_46 = arith.constant 0 : index
    %145 = vector.load %arg12[%144, %c0_45, %c0_46] : memref<8x2x32xf32, #tpu.memory_space<vmem>>, vector<1x2x32xf32>
    %146 = vector.shape_cast %145 : vector<1x2x32xf32> to vector<2x32xf32>
    %147 = vector.shape_cast %143 : vector<2x32xf32> to vector<1x2x32xf32>
    tpu.vector_store %arg12[%144, %c0_45, %c0_46], %147 {strides = array<i32>} : memref<8x2x32xf32, #tpu.memory_space<vmem>>, vector<1x2x32xf32>,
    %c4_i32 = arith.constant 4 : i32
    %148 = arith.index_cast %c4_i32 : i32 to index
    %c0_47 = arith.constant 0 : index
    %c0_48 = arith.constant 0 : index
    %149 = vector.load %arg11[%148, %c0_47, %c0_48] : memref<8x2x128xf32, #tpu.memory_space<vmem>>, vector<1x2x128xf32>
    %150 = vector.shape_cast %149 : vector<1x2x128xf32> to vector<2x128xf32>
    %cst_49 = arith.constant dense<0.000000e+00> : vector<2x128xf32>
    %151 = tpu.matmul %143, %9, %cst_49 {dimension_numbers = #tpu.dot_dimension_numbers<[1], [0], [0], [1], [0, 0, 1, 1], [], []>} : vector<2x32xf32>, vector<32x128xf32>, vector<2x128xf32> -> vector<2x128xf32>
    %152 = arith.addf %150, %151 : vector<2x128xf32>
    %153 = vector.extract_strided_slice %152 {offsets = [0, 0], sizes = [2, 32], strides = [1, 1]} : vector<2x128xf32> to vector<2x32xf32>
    %154 = arith.negf %153 : vector<2x32xf32>
    %155 = math.exp %154 : vector<2x32xf32>
    %cst_50 = arith.constant 1.000000e+00 : f32
    %156 = vector.broadcast %cst_50 : f32 to vector<2x32xf32>
    %157 = arith.addf %156, %155 : vector<2x32xf32>
    %158 = arith.divf %156, %157 : vector<2x32xf32>
    %159 = vector.extract_strided_slice %152 {offsets = [0, 32], sizes = [2, 32], strides = [1, 1]} : vector<2x128xf32> to vector<2x32xf32>
    %160 = arith.negf %159 : vector<2x32xf32>
    %161 = math.exp %160 : vector<2x32xf32>
    %cst_51 = arith.constant 1.000000e+00 : f32
    %162 = vector.broadcast %cst_51 : f32 to vector<2x32xf32>
    %163 = arith.addf %162, %161 : vector<2x32xf32>
    %164 = arith.divf %162, %163 : vector<2x32xf32>
    %165 = vector.extract_strided_slice %152 {offsets = [0, 64], sizes = [2, 32], strides = [1, 1]} : vector<2x128xf32> to vector<2x32xf32>
    %166 = math.tanh %165 : vector<2x32xf32>
    %167 = vector.extract_strided_slice %152 {offsets = [0, 96], sizes = [2, 32], strides = [1, 1]} : vector<2x128xf32> to vector<2x32xf32>
    %168 = arith.negf %167 : vector<2x32xf32>
    %169 = math.exp %168 : vector<2x32xf32>
    %cst_52 = arith.constant 1.000000e+00 : f32
    %170 = vector.broadcast %cst_52 : f32 to vector<2x32xf32>
    %171 = arith.addf %170, %169 : vector<2x32xf32>
    %172 = arith.divf %170, %171 : vector<2x32xf32>
    %173 = arith.mulf %164, %141 : vector<2x32xf32>
    %174 = arith.mulf %158, %166 : vector<2x32xf32>
    %175 = arith.addf %173, %174 : vector<2x32xf32>
    %176 = math.tanh %175 : vector<2x32xf32>
    %177 = arith.mulf %172, %176 : vector<2x32xf32>
    %178 = arith.index_cast %c4_i32 : i32 to index
    %c0_53 = arith.constant 0 : index
    %c0_54 = arith.constant 0 : index
    %179 = vector.load %arg12[%178, %c0_53, %c0_54] : memref<8x2x32xf32, #tpu.memory_space<vmem>>, vector<1x2x32xf32>
    %180 = vector.shape_cast %179 : vector<1x2x32xf32> to vector<2x32xf32>
    %181 = vector.shape_cast %177 : vector<2x32xf32> to vector<1x2x32xf32>
    tpu.vector_store %arg12[%178, %c0_53, %c0_54], %181 {strides = array<i32>} : memref<8x2x32xf32, #tpu.memory_space<vmem>>, vector<1x2x32xf32>,
    %c5_i32 = arith.constant 5 : i32
    %182 = arith.index_cast %c5_i32 : i32 to index
    %c0_55 = arith.constant 0 : index
    %c0_56 = arith.constant 0 : index
    %183 = vector.load %arg11[%182, %c0_55, %c0_56] : memref<8x2x128xf32, #tpu.memory_space<vmem>>, vector<1x2x128xf32>
    %184 = vector.shape_cast %183 : vector<1x2x128xf32> to vector<2x128xf32>
    %cst_57 = arith.constant dense<0.000000e+00> : vector<2x128xf32>
    %185 = tpu.matmul %177, %9, %cst_57 {dimension_numbers = #tpu.dot_dimension_numbers<[1], [0], [0], [1], [0, 0, 1, 1], [], []>} : vector<2x32xf32>, vector<32x128xf32>, vector<2x128xf32> -> vector<2x128xf32>
    %186 = arith.addf %184, %185 : vector<2x128xf32>
    %187 = vector.extract_strided_slice %186 {offsets = [0, 0], sizes = [2, 32], strides = [1, 1]} : vector<2x128xf32> to vector<2x32xf32>
    %188 = arith.negf %187 : vector<2x32xf32>
    %189 = math.exp %188 : vector<2x32xf32>
    %cst_58 = arith.constant 1.000000e+00 : f32
    %190 = vector.broadcast %cst_58 : f32 to vector<2x32xf32>
    %191 = arith.addf %190, %189 : vector<2x32xf32>
    %192 = arith.divf %190, %191 : vector<2x32xf32>
    %193 = vector.extract_strided_slice %186 {offsets = [0, 32], sizes = [2, 32], strides = [1, 1]} : vector<2x128xf32> to vector<2x32xf32>
    %194 = arith.negf %193 : vector<2x32xf32>
    %195 = math.exp %194 : vector<2x32xf32>
    %cst_59 = arith.constant 1.000000e+00 : f32
    %196 = vector.broadcast %cst_59 : f32 to vector<2x32xf32>
    %197 = arith.addf %196, %195 : vector<2x32xf32>
    %198 = arith.divf %196, %197 : vector<2x32xf32>
    %199 = vector.extract_strided_slice %186 {offsets = [0, 64], sizes = [2, 32], strides = [1, 1]} : vector<2x128xf32> to vector<2x32xf32>
    %200 = math.tanh %199 : vector<2x32xf32>
    %201 = vector.extract_strided_slice %186 {offsets = [0, 96], sizes = [2, 32], strides = [1, 1]} : vector<2x128xf32> to vector<2x32xf32>
    %202 = arith.negf %201 : vector<2x32xf32>
    %203 = math.exp %202 : vector<2x32xf32>
    %cst_60 = arith.constant 1.000000e+00 : f32
    %204 = vector.broadcast %cst_60 : f32 to vector<2x32xf32>
    %205 = arith.addf %204, %203 : vector<2x32xf32>
    %206 = arith.divf %204, %205 : vector<2x32xf32>
    %207 = arith.mulf %198, %175 : vector<2x32xf32>
    %208 = arith.mulf %192, %200 : vector<2x32xf32>
    %209 = arith.addf %207, %208 : vector<2x32xf32>
    %210 = math.tanh %209 : vector<2x32xf32>
    %211 = arith.mulf %206, %210 : vector<2x32xf32>
    %212 = arith.index_cast %c5_i32 : i32 to index
    %c0_61 = arith.constant 0 : index
    %c0_62 = arith.constant 0 : index
    %213 = vector.load %arg12[%212, %c0_61, %c0_62] : memref<8x2x32xf32, #tpu.memory_space<vmem>>, vector<1x2x32xf32>
    %214 = vector.shape_cast %213 : vector<1x2x32xf32> to vector<2x32xf32>
    %215 = vector.shape_cast %211 : vector<2x32xf32> to vector<1x2x32xf32>
    tpu.vector_store %arg12[%212, %c0_61, %c0_62], %215 {strides = array<i32>} : memref<8x2x32xf32, #tpu.memory_space<vmem>>, vector<1x2x32xf32>,
    %c6_i32 = arith.constant 6 : i32
    %216 = arith.index_cast %c6_i32 : i32 to index
    %c0_63 = arith.constant 0 : index
    %c0_64 = arith.constant 0 : index
    %217 = vector.load %arg11[%216, %c0_63, %c0_64] : memref<8x2x128xf32, #tpu.memory_space<vmem>>, vector<1x2x128xf32>
    %218 = vector.shape_cast %217 : vector<1x2x128xf32> to vector<2x128xf32>
    %cst_65 = arith.constant dense<0.000000e+00> : vector<2x128xf32>
    %219 = tpu.matmul %211, %9, %cst_65 {dimension_numbers = #tpu.dot_dimension_numbers<[1], [0], [0], [1], [0, 0, 1, 1], [], []>} : vector<2x32xf32>, vector<32x128xf32>, vector<2x128xf32> -> vector<2x128xf32>
    %220 = arith.addf %218, %219 : vector<2x128xf32>
    %221 = vector.extract_strided_slice %220 {offsets = [0, 0], sizes = [2, 32], strides = [1, 1]} : vector<2x128xf32> to vector<2x32xf32>
    %222 = arith.negf %221 : vector<2x32xf32>
    %223 = math.exp %222 : vector<2x32xf32>
    %cst_66 = arith.constant 1.000000e+00 : f32
    %224 = vector.broadcast %cst_66 : f32 to vector<2x32xf32>
    %225 = arith.addf %224, %223 : vector<2x32xf32>
    %226 = arith.divf %224, %225 : vector<2x32xf32>
    %227 = vector.extract_strided_slice %220 {offsets = [0, 32], sizes = [2, 32], strides = [1, 1]} : vector<2x128xf32> to vector<2x32xf32>
    %228 = arith.negf %227 : vector<2x32xf32>
    %229 = math.exp %228 : vector<2x32xf32>
    %cst_67 = arith.constant 1.000000e+00 : f32
    %230 = vector.broadcast %cst_67 : f32 to vector<2x32xf32>
    %231 = arith.addf %230, %229 : vector<2x32xf32>
    %232 = arith.divf %230, %231 : vector<2x32xf32>
    %233 = vector.extract_strided_slice %220 {offsets = [0, 64], sizes = [2, 32], strides = [1, 1]} : vector<2x128xf32> to vector<2x32xf32>
    %234 = math.tanh %233 : vector<2x32xf32>
    %235 = vector.extract_strided_slice %220 {offsets = [0, 96], sizes = [2, 32], strides = [1, 1]} : vector<2x128xf32> to vector<2x32xf32>
    %236 = arith.negf %235 : vector<2x32xf32>
    %237 = math.exp %236 : vector<2x32xf32>
    %cst_68 = arith.constant 1.000000e+00 : f32
    %238 = vector.broadcast %cst_68 : f32 to vector<2x32xf32>
    %239 = arith.addf %238, %237 : vector<2x32xf32>
    %240 = arith.divf %238, %239 : vector<2x32xf32>
    %241 = arith.mulf %232, %209 : vector<2x32xf32>
    %242 = arith.mulf %226, %234 : vector<2x32xf32>
    %243 = arith.addf %241, %242 : vector<2x32xf32>
    %244 = math.tanh %243 : vector<2x32xf32>
    %245 = arith.mulf %240, %244 : vector<2x32xf32>
    %246 = arith.index_cast %c6_i32 : i32 to index
    %c0_69 = arith.constant 0 : index
    %c0_70 = arith.constant 0 : index
    %247 = vector.load %arg12[%246, %c0_69, %c0_70] : memref<8x2x32xf32, #tpu.memory_space<vmem>>, vector<1x2x32xf32>
    %248 = vector.shape_cast %247 : vector<1x2x32xf32> to vector<2x32xf32>
    %249 = vector.shape_cast %245 : vector<2x32xf32> to vector<1x2x32xf32>
    tpu.vector_store %arg12[%246, %c0_69, %c0_70], %249 {strides = array<i32>} : memref<8x2x32xf32, #tpu.memory_space<vmem>>, vector<1x2x32xf32>,
    %c7_i32 = arith.constant 7 : i32
    %250 = arith.index_cast %c7_i32 : i32 to index
    %c0_71 = arith.constant 0 : index
    %c0_72 = arith.constant 0 : index
    %251 = vector.load %arg11[%250, %c0_71, %c0_72] : memref<8x2x128xf32, #tpu.memory_space<vmem>>, vector<1x2x128xf32>
    %252 = vector.shape_cast %251 : vector<1x2x128xf32> to vector<2x128xf32>
    %cst_73 = arith.constant dense<0.000000e+00> : vector<2x128xf32>
    %253 = tpu.matmul %245, %9, %cst_73 {dimension_numbers = #tpu.dot_dimension_numbers<[1], [0], [0], [1], [0, 0, 1, 1], [], []>} : vector<2x32xf32>, vector<32x128xf32>, vector<2x128xf32> -> vector<2x128xf32>
    %254 = arith.addf %252, %253 : vector<2x128xf32>
    %255 = vector.extract_strided_slice %254 {offsets = [0, 0], sizes = [2, 32], strides = [1, 1]} : vector<2x128xf32> to vector<2x32xf32>
    %256 = arith.negf %255 : vector<2x32xf32>
    %257 = math.exp %256 : vector<2x32xf32>
    %cst_74 = arith.constant 1.000000e+00 : f32
    %258 = vector.broadcast %cst_74 : f32 to vector<2x32xf32>
    %259 = arith.addf %258, %257 : vector<2x32xf32>
    %260 = arith.divf %258, %259 : vector<2x32xf32>
    %261 = vector.extract_strided_slice %254 {offsets = [0, 32], sizes = [2, 32], strides = [1, 1]} : vector<2x128xf32> to vector<2x32xf32>
    %262 = arith.negf %261 : vector<2x32xf32>
    %263 = math.exp %262 : vector<2x32xf32>
    %cst_75 = arith.constant 1.000000e+00 : f32
    %264 = vector.broadcast %cst_75 : f32 to vector<2x32xf32>
    %265 = arith.addf %264, %263 : vector<2x32xf32>
    %266 = arith.divf %264, %265 : vector<2x32xf32>
    %267 = vector.extract_strided_slice %254 {offsets = [0, 64], sizes = [2, 32], strides = [1, 1]} : vector<2x128xf32> to vector<2x32xf32>
    %268 = math.tanh %267 : vector<2x32xf32>
    %269 = vector.extract_strided_slice %254 {offsets = [0, 96], sizes = [2, 32], strides = [1, 1]} : vector<2x128xf32> to vector<2x32xf32>
    %270 = arith.negf %269 : vector<2x32xf32>
    %271 = math.exp %270 : vector<2x32xf32>
    %cst_76 = arith.constant 1.000000e+00 : f32
    %272 = vector.broadcast %cst_76 : f32 to vector<2x32xf32>
    %273 = arith.addf %272, %271 : vector<2x32xf32>
    %274 = arith.divf %272, %273 : vector<2x32xf32>
    %275 = arith.mulf %266, %243 : vector<2x32xf32>
    %276 = arith.mulf %260, %268 : vector<2x32xf32>
    %277 = arith.addf %275, %276 : vector<2x32xf32>
    %278 = math.tanh %277 : vector<2x32xf32>
    %279 = arith.mulf %274, %278 : vector<2x32xf32>
    %280 = arith.index_cast %c7_i32 : i32 to index
    %c0_77 = arith.constant 0 : index
    %c0_78 = arith.constant 0 : index
    %281 = vector.load %arg12[%280, %c0_77, %c0_78] : memref<8x2x32xf32, #tpu.memory_space<vmem>>, vector<1x2x32xf32>
    %282 = vector.shape_cast %281 : vector<1x2x32xf32> to vector<2x32xf32>
    %283 = vector.shape_cast %279 : vector<2x32xf32> to vector<1x2x32xf32>
    tpu.vector_store %arg12[%280, %c0_77, %c0_78], %283 {strides = array<i32>} : memref<8x2x32xf32, #tpu.memory_space<vmem>>, vector<1x2x32xf32>,
    %c8_i32 = arith.constant 8 : i32
    %c0_79 = arith.constant 0 : index
    %c0_80 = arith.constant 0 : index
    %284 = vector.load %arg9[%c0_79, %c0_80] : memref<2x32xf32, #tpu.memory_space<vmem>>, vector<2x32xf32>
    tpu.vector_store %arg9[%c0_79, %c0_80], %279 {strides = array<i32>} : memref<2x32xf32, #tpu.memory_space<vmem>>, vector<2x32xf32>,
    %c0_81 = arith.constant 0 : index
    %c0_82 = arith.constant 0 : index
    %285 = vector.load %arg10[%c0_81, %c0_82] : memref<2x32xf32, #tpu.memory_space<vmem>>, vector<2x32xf32>
    tpu.vector_store %arg10[%c0_81, %c0_82], %277 {strides = array<i32>} : memref<2x32xf32, #tpu.memory_space<vmem>>, vector<2x32xf32>,
    %c0_83 = arith.constant 0 : index
    %c0_84 = arith.constant 0 : index
    %c0_85 = arith.constant 0 : index
    %286 = vector.load %arg12[%c0_83, %c0_84, %c0_85] : memref<8x2x32xf32, #tpu.memory_space<vmem>>, vector<8x2x32xf32>
    %287 = vector.shape_cast %286 : vector<8x2x32xf32> to vector<16x32xf32>
    %c0_86 = arith.constant 0 : index
    %c0_87 = arith.constant 0 : index
    %288 = vector.load %arg4[%c0_86, %c0_87] : memref<32x8xf32, #tpu.memory_space<vmem>>, vector<32x8xf32>
    %cst_88 = arith.constant dense<0.000000e+00> : vector<16x8xf32>
    %289 = tpu.matmul %287, %288, %cst_88 {dimension_numbers = #tpu.dot_dimension_numbers<[1], [0], [0], [1], [0, 0, 1, 1], [], []>} : vector<16x32xf32>, vector<32x8xf32>, vector<16x8xf32> -> vector<16x8xf32>
    %c0_89 = arith.constant 0 : index
    %c0_90 = arith.constant 0 : index
    %290 = vector.load %arg5[%c0_89, %c0_90] : memref<1x8xf32, #tpu.memory_space<vmem>>, vector<1x8xf32>
    %291 = vector.broadcast %290 : vector<1x8xf32> to vector<16x8xf32>
    %292 = arith.addf %289, %291 : vector<16x8xf32>
    %293 = vector.shape_cast %292 : vector<16x8xf32> to vector<8x2x8xf32>
    %c0_91 = arith.constant 0 : index
    %c0_92 = arith.constant 0 : index
    %c0_93 = arith.constant 0 : index
    %294 = vector.load %arg8[%c0_91, %c0_92, %c0_93] : memref<8x2x8xf32, #tpu.memory_space<vmem>>, vector<8x2x8xf32>
    tpu.vector_store %arg8[%c0_91, %c0_92, %c0_93], %293 {strides = array<i32>} : memref<8x2x8xf32, #tpu.memory_space<vmem>>, vector<8x2x8xf32>,
    return
  }
}

</mosaic_0001>

<bundles_post_ra>
// kernel: lstm_model_forward.1
= control target key start
LH: loop header
LB: loop body
LE: loop exit
PB: predicated region body
PF: predicated region fallthrough
CT: control target
= control target key end

     0   :  { %16 = vsyncpa [#allocation5], 0  ;;  %v64_v3 = vlaneseq  ;;  %v1670_v8 = vmov 1983009808   ;;  %v1671_v21 = vmov 0.0|0.0   ;;  %vm1672_vm0 = vmmov 0   ;;  %s1979_s0 = inlined_call_operand.vmem [shape: f32[8,2,16], index: 0, kind: input, shape index: {}]   ;;  %s1980_s1 = inlined_call_operand.vmem [shape: f32[16,128], index: 1, kind: input, shape index: {}]   ;;  %s1981_s2 = inlined_call_operand.vmem [shape: f32[32,128], index: 2, kind: input, shape index: {}]   ;;  %s1982_s3 = inlined_call_operand.vmem [shape: f32[1,128], index: 3, kind: input, shape index: {}]   ;;  %s1983_s4 = inlined_call_operand.vmem [shape: f32[32,8], index: 4, kind: input, shape index: {}]   ;;  %s1984_s5 = inlined_call_operand.vmem [shape: f32[1,8], index: 5, kind: input, shape index: {}]   ;;  %s1985_s6 = inlined_call_operand.vmem [shape: f32[2,32], index: 6, kind: input, shape index: {}]   ;;  %s1986_s7 = inlined_call_operand.vmem [shape: f32[2,32], index: 7, kind: input, shape index: {}]   ;;  %s1987_s8 = inlined_call_operand.vmem [shape: f32[8,2,8], index: 8, kind: output, shape index: {0}]   ;;  %s1988_s9 = inlined_call_operand.hbm [shape: f32[2,32], index: 9, kind: output, shape index: {1}]   ;;  %s1989_s10 = inlined_call_operand.hbm [shape: f32[2,32], index: 10, kind: output, shape index: {2}]  }
   0x1   :  { %v42_v0 = vld [vmem:[%s1980_s1] sm:$0xff]  ;;  %v43_v1 = vld [vmem:[%s1980_s1 + $0x8] sm:$0xff]  ;;  %v62_v9 = vunpack.c.l.s4 %v1670_v8  ;;  %1493 = vmatprep.subr.bf16.mxu1 %v1671_v21  ;;  %v227_v23 = vld [vmem:[%s1981_s2 + $0x10] sm:$0xff]  ;;  %v1673_v27 = vmov 0.0  }
   0x2   :  { %v34_v2 = vld [vmem:[%s1979_s0] sm:$0x3]  ;;  %v1489_v4 = vpack.c.bf16 %v43_v1, %v42_v0  ;;  %v35_v5 = vld [vmem:[%s1979_s0 + $0x2] sm:$0x3]  ;;  %v36_v6 = vld [vmem:[%s1979_s0 + $0x4] sm:$0x3]  ;;  %1398 = vmatprep.mubr.msk.f32.mxu1 %vm1672_vm0, %v1673_v27 }
   0x3   :  { %v37_v7 = vld [vmem:[%s1979_s0 + $0x6] sm:$0x3]  ;;  %v59_v10 = vcombine.low %v34_v2, %v35_v5  ;;  %v65_v11 = vshrl.u32 %v64_v3, 7  ;;  %v38_v12 = vld [vmem:[%s1979_s0 + $0x8] sm:$0x3]  ;;  %v63_v15 = vunpack.c.0.s8 %v62_v9  ;;  %v228_v24 = vld [vmem:[%s1981_s2 + $0x18] sm:$0xff] }
   0x4   :  { %v39_v13 = vld [vmem:[%s1979_s0 + $0xa] sm:$0x3]  ;;  %1490 = vmatprep.subr.bf16.mxu0 %v1489_v4  ;;  %v60_v14 = vcombine.low %v36_v6, %v37_v7  ;;  %v40_v16 = vld [vmem:[%s1979_s0 + $0xc] sm:$0x3]  ;;  %v41_v17 = vld [vmem:[%s1979_s0 + $0xe] sm:$0x3] }
   0x5   :  { %v76_v18 = vcombine.low %v38_v12, %v39_v13  ;;  %v225_v19 = vld [vmem:[%s1981_s2] sm:$0xff]  ;;  %1492 = vmatpush3.bf16.msra.mxu0 %v1489_v4  ;;  %v77_v20 = vcombine.low %v40_v16, %v41_v17  ;;  %v226_v22 = vld [vmem:[%s1981_s2 + $0x8] sm:$0xff]  ;;  %v1777_v25 = vsub.s32 %v63_v15, %v65_v11 }
   0x6   :  { %v1779_v26 = vpack.c.bf16 %v226_v22, %v225_v19  ;;  %1499 = vmatprep.subr.bf16.mxu0 %v1671_v21 }
   0x7   :  { %17 = vsyncpa [#allocation7], 0  ;;  %v1784_v28 = vpack.c.bf16 %v228_v24, %v227_v23  ;;  %v67_v29 = vrot.slane %v59_v10, %v1777_v25  ;;  %v74_v30 = vrot.slane %v60_v14, %v1777_v25  ;;  %v84_v31 = vrot.slane %v76_v18, %v1777_v25  ;;  %v229_v35 = vld [vmem:[%s1985_s6] sm:$0x3]  ;;  %s1675_s23 = smov 32   ;;  %s1678_s12 = smov [#allocation6]  }
   0x8   :  { %v91_v32 = vrot.slane %v77_v20, %v1777_v25  ;;  %1495 = vmatpush3.bf16.msra.mxu1 %v1779_v26  ;;  %vm93_vm1 = vcmask 130048   ;;  %vm232_vm2 = vcmask 261120   ;;  %v1307_v36 = vld [vmem:[%s1982_s3] ss:$0 sm:$0xff]  ;;  %s1674_s3 = smov 64   ;;  %vm339_vm3 = vcmask 254976  }
   0x9   :  { %1496 = vmatprep.subr.bf16.mxu1 %v1671_v21  ;;  %v75_v33 = vcombine.low %v67_v29, %v74_v30  ;;  %v230_v56 = vld [vmem:[%s1986_s7] sm:$0x3]  ;;  %s1676_s7 = smov 96   ;;  %s1293_s13 = sshll.u32 %s1678_s12, 4  ;;  %s1294_s13 = int_to_ptr.vmem [resolvable:$true] %s1293_s13 }
   0xa   :  { %v92_v34 = vcombine.low %v84_v31, %v91_v32 }
   0xb   :  { %1387 = vmatprep.mubr.msk.f32.mxu0 %vm93_vm1, %v75_v33 }
   0xc   :  { %1498 = vmatpush3.bf16.msra.mxu1 %v1784_v28  ;;  %1388 = vmatmul.mubr.msk.f32.vlgmr.msra.gmra.mrb[0].mxu0 %vm93_vm1, %v92_v34 }
   0xd   :  { %1505 = vmatprep.subr.bf16.mxu1 %v1671_v21  ;;  %1501 = vmatpush3.bf16.msra.mxu0 %v1779_v26 }
   0xe   :  { %1409 = vmatprep.mubr.msk.f32.mxu0 %vm1672_vm0, %v1673_v27  ;;  %1502 = vmatprep.subr.bf16.mxu0 %v1671_v21 }
   0xf   :  { %1399 = vmatmul.mubr.msk.f32.vlgmr.msra.gmra.mrb[0].mxu1 %vm232_vm2, %v229_v35 }
  0x10   :  { %1507 = vmatpush3.bf16.msra.mxu1 %v1779_v26  ;;  %1420 = vmatprep.mubr.msk.f32.mxu1 %vm1672_vm0, %v1673_v27 }
  0x11   :  { %1508 = vmatprep.subr.bf16.mxu1 %v1671_v21  ;;  %1504 = vmatpush3.bf16.msra.mxu0 %v1784_v28 }
  0x12   :  { %1511 = vmatprep.subr.bf16.mxu0 %v1671_v21 }
  0x14   :  { %1510 = vmatpush3.bf16.msra.mxu1 %v1784_v28 }
  0x15   :  { %1517 = vmatprep.subr.bf16.mxu1 %v1671_v21 }
  0xdf   :  { %v1389_v37 = vpop.f32.mrb[0].mxu0 }
  0xe0   :  { %v170_v38 = vadd.f32 %v1389_v37, %v1307_v36  ;;  %v164_v39 = vpop.f32.mrb[1].mxu0 }
  0xe1   :  { %v165_v40 = vadd.f32 %v1307_v36, %v164_v39 }
  0xe2   :  { %v302_v41 = vpop.f32.mrb[0].mxu1  ;;  %v192_v42 = vcombine.high %v170_v38, %v170_v38  ;;  %v199_v43 = vrot.slane %v170_v38, %v1777_v25  ;;  %1312 = vst.sshfl [vmem:[#allocation2 + $0x8] sm:$0x3 pattern:$0x76325410] %v170_v38 }
  0xe3   :  { %v1400_v44 = vpop.f32.mrb[1].mxu1  ;;  %v175_v45 = vcombine.high %v165_v40, %v165_v40  ;;  %v182_v46 = vrot.slane %v165_v40, %v1777_v25  ;;  %1310 = vst.sshfl [vmem:[#allocation2] sm:$0x3 pattern:$0x76325410] %v165_v40 }
  0xe4   :  { %v206_v47 = vrot.slane %v192_v42, %v1777_v25  ;;  %v207_v48 = vcombine.high %v199_v43, %v199_v43  ;;  %1313 = vst.sshfl [vmem:[#allocation2 + $0xc] sm:$0x3 pattern:$0x76325410] %v192_v42 }
  0xe5   :  { %v189_v49 = vrot.slane %v175_v45, %v1777_v25  ;;  %v190_v50 = vcombine.high %v182_v46, %v182_v46  ;;  %1311 = vst.sshfl [vmem:[#allocation2 + $0x4] sm:$0x3 pattern:$0x76325410] %v175_v45 }
  0xe6   :  { %v208_v51 = vcombine.high %v206_v47, %v206_v47  ;;  %222 = vst [vmem:[#allocation2 + $0xa] sm:$0x3] %v207_v48 }
  0xe7   :  { %v191_v52 = vcombine.high %v189_v49, %v189_v49  ;;  %218 = vst [vmem:[#allocation2 + $0x2] sm:$0x3] %v190_v50 }
  0xe8   :  { %224 = vst [vmem:[#allocation2 + $0xe] sm:$0x3] %v208_v51 }
  0xe9   :  { %220 = vst [vmem:[#allocation2 + $0x6] sm:$0x3] %v191_v52 }
  0xea   :  { %v231_v53 = vld [vmem:[#allocation2] sm:$0x3] }
  0xeb   :  { %v306_v54 = vadd.f32 %v302_v41, %v231_v53 }
  0xec   :  { %v447_v30 = vld [vmem:[#allocation2 + $0x4] sm:$0x3] }
  0xed   :  { %1558 = vtanh.f32 %v306_v54  ;;  %v1315_v57 = vmul.f32 -1.442695, %v306_v54 }
  0xee   :  { %v342_v7 = vld [vmem:[#allocation2 + $0x2] sm:$0x3] }
  0xef   :  { %1560 = vpow2.f32 %v1315_v57 }
  0xf0   :  { %v552_v48 = vld [vmem:[#allocation2 + $0x6] sm:$0x3] }
  0xf7   :  { %v1559_v55 = vpop.eup %1558 }
  0xf8   :  { %320 = vrot.lane.b32.xlu0 %v1559_v55, %s1674_s3 }
  0xf9   :  { %v1561_v58 = vpop.eup %1560 }
  0xfa   :  { %v310_v59 = vadd.f32 1.0, %v1561_v58 }
  0xfc   :  { %315 = vrot.lane.b32.xlu0 %v230_v56, %s1675_s23  ;;  %1562 = vrcp.f32 %v310_v59 }
 0x106   :  { %v1563_v60 = vpop.eup %1562 }
 0x16a   :  { %v321_v61 = vpop.permute.xlu0 %320 }
 0x16b   :  { %v323_v62 = vmul.f32 %v1563_v60, %v321_v61 }
 0x16d   :  { %325 = vrot.lane.b32.xlu1 %v323_v62, %s1675_s23 }
 0x16e   :  { %v316_v63 = vpop.permute.xlu0 %315 }
 0x16f   :  { %v318_v0 = vmul.f32 %v1563_v60, %v316_v63 }
 0x1df   :  { %v326_v1 = vpop.permute.xlu1 %325 }
 0x1e0   :  { %v328_v2 = vadd.f32 %v326_v1, %v318_v0 }
 0x1e2   :  { %1564 = vtanh.f32 %v328_v2 }
 0x1ec   :  { %v1565_v3 = vpop.eup %1564 }
 0x1ed   :  { %331 = vrot.lane.b32.xlu1 %v1565_v3, %s1674_s3 }
 0x25f   :  { %v332_v4 = vpop.permute.xlu1 %331 }
 0x260   :  { %v334_v5 = vmul.f32 %v1563_v60, %v332_v4 }
 0x262   :  { %336 = vrot.lane.b32.xlu0 %v334_v5, %s1675_s23 }
 0x2d4   :  { %v337_v6 = vpop.permute.xlu0 %336 }
 0x2d5   :  { %340 = vst.msk [vmem:[#allocation3] sm:$0x3] %vm339_vm3, %v337_v6  ;;  %1410 = vmatmul.mubr.msk.f32.vlgmr.msra.gmra.mrb[2].mxu0 %vm232_vm2, %v337_v6 }
 0x2d6   :  { %1513 = vmatpush3.bf16.msra.mxu0 %v1779_v26  ;;  %1431 = vmatprep.mubr.msk.f32.mxu0 %vm1672_vm0, %v1673_v27 }
 0x2d7   :  { %1514 = vmatprep.subr.bf16.mxu0 %v1671_v21 }
 0x2da   :  { %1516 = vmatpush3.bf16.msra.mxu0 %v1784_v28 }
 0x2db   :  { %1523 = vmatprep.subr.bf16.mxu0 %v1671_v21 }
 0x3a8   :  { %v411_v8 = vpop.f32.mrb[2].mxu0 }
 0x3a9   :  { %v415_v9 = vadd.f32 %v411_v8, %v342_v7  ;;  %v1411_v10 = vpop.f32.mrb[3].mxu0 }
 0x3ab   :  { %1566 = vtanh.f32 %v415_v9  ;;  %v1317_v12 = vmul.f32 -1.442695, %v415_v9 }
 0x3ad   :  { %1568 = vpow2.f32 %v1317_v12 }
 0x3b5   :  { %v1567_v11 = vpop.eup %1566 }
 0x3b6   :  { %425 = vrot.lane.b32.xlu1 %v1567_v11, %s1674_s3 }
 0x3b7   :  { %v1569_v13 = vpop.eup %1568 }
 0x3b8   :  { %v419_v14 = vadd.f32 1.0, %v1569_v13 }
 0x3ba   :  { %1570 = vrcp.f32 %v419_v14 }
 0x3c4   :  { %v1571_v15 = vpop.eup %1570 }
 0x3c5   :  { %v423_v18 = vmul.f32 %v1571_v15, %v328_v2  ;;  %v657_v2 = vld [vmem:[#allocation2 + $0x8] sm:$0x3] }
 0x428   :  { %v426_v16 = vpop.permute.xlu1 %425 }
 0x429   :  { %v428_v17 = vmul.f32 %v1571_v15, %v426_v16 }
 0x42b   :  { %430 = vrot.lane.b32.xlu0 %v428_v17, %s1675_s23 }
 0x49d   :  { %v431_v19 = vpop.permute.xlu0 %430 }
 0x49e   :  { %v433_v20 = vadd.f32 %v431_v19, %v423_v18 }
 0x4a0   :  { %1572 = vtanh.f32 %v433_v20 }
 0x4aa   :  { %v1573_v22 = vpop.eup %1572 }
 0x4ab   :  { %436 = vrot.lane.b32.xlu1 %v1573_v22, %s1674_s3 }
 0x51d   :  { %v437_v23 = vpop.permute.xlu1 %436 }
 0x51e   :  { %v439_v24 = vmul.f32 %v1571_v15, %v437_v23 }
 0x520   :  { %441 = vrot.lane.b32.xlu0 %v439_v24, %s1675_s23 }
 0x592   :  { %v442_v29 = vpop.permute.xlu0 %441 }
 0x593   :  { %445 = vst.msk [vmem:[#allocation3 + $0x2] sm:$0x3] %vm339_vm3, %v442_v29  ;;  %1421 = vmatmul.mubr.msk.f32.vlgmr.msra.gmra.mrb[2].mxu1 %vm232_vm2, %v442_v29 }
 0x594   :  { %1519 = vmatpush3.bf16.msra.mxu1 %v1779_v26  ;;  %1442 = vmatprep.mubr.msk.f32.mxu1 %vm1672_vm0, %v1673_v27 }
 0x595   :  { %1520 = vmatprep.subr.bf16.mxu1 %v1671_v21 }
 0x598   :  { %1522 = vmatpush3.bf16.msra.mxu1 %v1784_v28 }
 0x599   :  { %1529 = vmatprep.subr.bf16.mxu1 %v1671_v21 }
 0x666   :  { %v516_v31 = vpop.f32.mrb[2].mxu1 }
 0x667   :  { %v520_v32 = vadd.f32 %v516_v31, %v447_v30  ;;  %v1422_v33 = vpop.f32.mrb[3].mxu1 }
 0x669   :  { %1574 = vtanh.f32 %v520_v32  ;;  %v1319_v35 = vmul.f32 -1.442695, %v520_v32 }
 0x66b   :  { %1576 = vpow2.f32 %v1319_v35 }
 0x673   :  { %v1575_v34 = vpop.eup %1574 }
 0x674   :  { %530 = vrot.lane.b32.xlu1 %v1575_v34, %s1674_s3 }
 0x675   :  { %v1577_v36 = vpop.eup %1576 }
 0x676   :  { %v524_v37 = vadd.f32 1.0, %v1577_v36 }
 0x678   :  { %1578 = vrcp.f32 %v524_v37 }
 0x682   :  { %v1579_v38 = vpop.eup %1578 }
 0x683   :  { %v528_v41 = vmul.f32 %v1579_v38, %v433_v20  ;;  %v762_v20 = vld [vmem:[#allocation2 + $0xa] sm:$0x3] }
 0x6e6   :  { %v531_v39 = vpop.permute.xlu1 %530 }
 0x6e7   :  { %v533_v40 = vmul.f32 %v1579_v38, %v531_v39  ;;  %v1083_v39 = vld [vmem:[#allocation3 + $0x2] sm:$0x3] }
 0x6e9   :  { %535 = vrot.lane.b32.xlu0 %v533_v40, %s1675_s23 }
 0x75b   :  { %v536_v42 = vpop.permute.xlu0 %535 }
 0x75c   :  { %v538_v43 = vadd.f32 %v536_v42, %v528_v41  ;;  %v1082_v42 = vld [vmem:[#allocation3] sm:$0x3] }
 0x75e   :  { %1580 = vtanh.f32 %v538_v43 }
 0x768   :  { %v1581_v44 = vpop.eup %1580 }
 0x769   :  { %541 = vrot.lane.b32.xlu1 %v1581_v44, %s1674_s3 }
 0x7db   :  { %v542_v45 = vpop.permute.xlu1 %541 }
 0x7dc   :  { %v544_v46 = vmul.f32 %v1579_v38, %v542_v45 }
 0x7de   :  { %546 = vrot.lane.b32.xlu0 %v544_v46, %s1675_s23 }
 0x850   :  { %v547_v47 = vpop.permute.xlu0 %546 }
 0x851   :  { %550 = vst.msk [vmem:[#allocation3 + $0x4] sm:$0x3] %vm339_vm3, %v547_v47  ;;  %1432 = vmatmul.mubr.msk.f32.vlgmr.msra.gmra.mrb[4].mxu0 %vm232_vm2, %v547_v47 }
 0x852   :  { %1525 = vmatpush3.bf16.msra.mxu0 %v1779_v26  ;;  %1453 = vmatprep.mubr.msk.f32.mxu0 %vm1672_vm0, %v1673_v27 }
 0x853   :  { %1526 = vmatprep.subr.bf16.mxu0 %v1671_v21 }
 0x856   :  { %1528 = vmatpush3.bf16.msra.mxu0 %v1784_v28 }
 0x857   :  { %1535 = vmatprep.subr.bf16.mxu0 %v1671_v21 }
 0x858   :  { %v1084_v40 = vld [vmem:[#allocation3 + $0x4] sm:$0x3] }
 0x924   :  { %v621_v49 = vpop.f32.mrb[4].mxu0 }
 0x925   :  { %v625_v50 = vadd.f32 %v621_v49, %v552_v48  ;;  %v1433_v51 = vpop.f32.mrb[5].mxu0  ;;  %v867_v48 = vld [vmem:[#allocation2 + $0xc] sm:$0x3] }
 0x927   :  { %1582 = vtanh.f32 %v625_v50  ;;  %v1321_v53 = vmul.f32 -1.442695, %v625_v50 }
 0x929   :  { %1584 = vpow2.f32 %v1321_v53 }
 0x931   :  { %v1583_v52 = vpop.eup %1582 }
 0x932   :  { %635 = vrot.lane.b32.xlu1 %v1583_v52, %s1674_s3 }
 0x933   :  { %v1585_v54 = vpop.eup %1584 }
 0x934   :  { %v629_v55 = vadd.f32 1.0, %v1585_v54 }
 0x936   :  { %1586 = vrcp.f32 %v629_v55 }
 0x940   :  { %v1587_v56 = vpop.eup %1586 }
 0x941   :  { %v633_v59 = vmul.f32 %v1587_v56, %v538_v43  ;;  %v1109_v43 = vcombine.low %v1082_v42, %v1083_v39 }
 0x943   :  { %v1117_v45 = vrot.slane %v1109_v43, %v1777_v25 }
 0x9a4   :  { %v636_v57 = vpop.permute.xlu1 %635 }
 0x9a5   :  { %v638_v58 = vmul.f32 %v1587_v56, %v636_v57 }
 0x9a7   :  { %640 = vrot.lane.b32.xlu0 %v638_v58, %s1675_s23 }
 0xa19   :  { %v641_v60 = vpop.permute.xlu0 %640 }
 0xa1a   :  { %v643_v61 = vadd.f32 %v641_v60, %v633_v59 }
 0xa1c   :  { %1588 = vtanh.f32 %v643_v61 }
 0xa26   :  { %v1589_v62 = vpop.eup %1588 }
 0xa27   :  { %646 = vrot.lane.b32.xlu1 %v1589_v62, %s1674_s3 }
 0xa99   :  { %v647_v63 = vpop.permute.xlu1 %646 }
 0xa9a   :  { %v649_v0 = vmul.f32 %v1587_v56, %v647_v63 }
 0xa9c   :  { %651 = vrot.lane.b32.xlu0 %v649_v0, %s1675_s23 }
 0xb0e   :  { %v652_v1 = vpop.permute.xlu0 %651 }
 0xb0f   :  { %655 = vst.msk [vmem:[#allocation3 + $0x6] sm:$0x3] %vm339_vm3, %v652_v1  ;;  %1443 = vmatmul.mubr.msk.f32.vlgmr.msra.gmra.mrb[4].mxu1 %vm232_vm2, %v652_v1 }
 0xb10   :  { %1531 = vmatpush3.bf16.msra.mxu1 %v1779_v26  ;;  %1464 = vmatprep.mubr.msk.f32.mxu1 %vm1672_vm0, %v1673_v27 }
 0xb11   :  { %1532 = vmatprep.subr.bf16.mxu1 %v1671_v21 }
 0xb14   :  { %1534 = vmatpush3.bf16.msra.mxu1 %v1784_v28 }
 0xb16   :  { %v1085_v38 = vld [vmem:[#allocation3 + $0x6] sm:$0x3] }
 0xb17   :  { %v1110_v41 = vcombine.low %v1084_v40, %v1085_v38 }
 0xb19   :  { %v1124_v44 = vrot.slane %v1110_v41, %v1777_v25 }
 0xb1b   :  { %v1125_v47 = vcombine.low %v1117_v45, %v1124_v44 }
 0xbe2   :  { %v726_v3 = vpop.f32.mrb[4].mxu1 }
 0xbe3   :  { %v730_v4 = vadd.f32 %v726_v3, %v657_v2  ;;  %v1444_v5 = vpop.f32.mrb[5].mxu1  ;;  %v972_v2 = vld [vmem:[#allocation2 + $0xe] sm:$0x3] }
 0xbe5   :  { %1590 = vtanh.f32 %v730_v4  ;;  %v1323_v7 = vmul.f32 -1.442695, %v730_v4 }
 0xbe7   :  { %1592 = vpow2.f32 %v1323_v7 }
 0xbef   :  { %v1591_v6 = vpop.eup %1590 }
 0xbf0   :  { %740 = vrot.lane.b32.xlu1 %v1591_v6, %s1674_s3 }
 0xbf1   :  { %v1593_v8 = vpop.eup %1592 }
 0xbf2   :  { %v734_v9 = vadd.f32 1.0, %v1593_v8 }
 0xbf4   :  { %1594 = vrcp.f32 %v734_v9 }
 0xbfe   :  { %v1595_v10 = vpop.eup %1594 }
 0xbff   :  { %v738_v13 = vmul.f32 %v1595_v10, %v643_v61 }
 0xc62   :  { %v741_v11 = vpop.permute.xlu1 %740 }
 0xc63   :  { %v743_v12 = vmul.f32 %v1595_v10, %v741_v11 }
 0xc65   :  { %745 = vrot.lane.b32.xlu0 %v743_v12, %s1675_s23 }
 0xcd7   :  { %v746_v14 = vpop.permute.xlu0 %745 }
 0xcd8   :  { %v748_v15 = vadd.f32 %v746_v14, %v738_v13 }
 0xcda   :  { %1596 = vtanh.f32 %v748_v15 }
 0xce4   :  { %v1597_v16 = vpop.eup %1596 }
 0xce5   :  { %751 = vrot.lane.b32.xlu1 %v1597_v16, %s1674_s3 }
 0xd57   :  { %v752_v17 = vpop.permute.xlu1 %751 }
 0xd58   :  { %v754_v18 = vmul.f32 %v1595_v10, %v752_v17  ;;  %v1090_v17 = vld [vmem:[%s1983_s4] sm:$0xff] }
 0xd5a   :  { %756 = vrot.lane.b32.xlu0 %v754_v18, %s1675_s23  ;;  %v1091_v18 = vld [vmem:[%s1983_s4 + $0x8] sm:$0xff] }
 0xdcc   :  { %v757_v19 = vpop.permute.xlu0 %756 }
 0xdcd   :  { %760 = vst.msk [vmem:[#allocation3 + $0x8] sm:$0x3] %vm339_vm3, %v757_v19  ;;  %1454 = vmatmul.mubr.msk.f32.vlgmr.msra.gmra.mrb[6].mxu0 %vm232_vm2, %v757_v19  ;;  %v1092_v19 = vld [vmem:[%s1983_s4 + $0x10] sm:$0xff] }
 0xdce   :  { %1537 = vmatpush3.bf16.msra.mxu0 %v1779_v26  ;;  %1475 = vmatprep.mubr.msk.f32.mxu0 %vm1672_vm0, %v1673_v27 }
 0xdcf   :  { %1538 = vmatprep.subr.bf16.mxu0 %v1671_v21 }
 0xdd2   :  { %1540 = vmatpush3.bf16.msra.mxu0 %v1784_v28 }
 0xea0   :  { %v831_v22 = vpop.f32.mrb[6].mxu0 }
 0xea1   :  { %v835_v23 = vadd.f32 %v831_v22, %v762_v20  ;;  %v1455_v24 = vpop.f32.mrb[7].mxu0  ;;  %v1541_v20 = vpack.c.bf16 %v1091_v18, %v1090_v17  ;;  %v1093_v22 = vld [vmem:[%s1983_s4 + $0x18] sm:$0xff]  ;;  %s1677_s4 = smov [#allocation4]  }
 0xea2   :  { %s1283_s11 = sshll.u32 %s1677_s4, 4  ;;  %s1284_s11 = int_to_ptr.vmem [resolvable:$true] %s1283_s11 }
 0xea3   :  { %1598 = vtanh.f32 %v835_v23  ;;  %v1325_v30 = vmul.f32 -1.442695, %v835_v23  ;;  %v1545_v23 = vpack.c.bf16 %v1093_v22, %v1092_v19  ;;  %1542 = vmatprep.subr.bf16.mxu1 %v1541_v20  ;;  %s1622_s14 = scalar_lea.vmem %s1284_s11, 32  ;;  %p1627_p1 = scmp.lt.s32.totalorder %s1284_s11, %s1284_s11 }
 0xea4   :  { %p1623_p0 = scmp.ne.s32.totalorder %s1284_s11, %s1622_s14  ;;  %p1628_p2 = scmp.lt.s32.totalorder %s1622_s14, %s1622_s14 }
 0xea5   :  { %1600 = vpow2.f32 %v1325_v30 }
 0xea6   :  { %p1629_p3 = por %p1628_p2, %p1627_p1 }
 0xea8   :  { %p1630_p4 = pnand %p1629_p3, %p1623_p0 }
 0xead   :  { %v1599_v29 = vpop.eup %1598 }
 0xeae   :  { %845 = vrot.lane.b32.xlu1 %v1599_v29, %s1674_s3 }
 0xeaf   :  { %v1601_v31 = vpop.eup %1600 }
 0xeb0   :  { %v839_v32 = vadd.f32 1.0, %v1601_v31 }
 0xeb2   :  { %1602 = vrcp.f32 %v839_v32 }
 0xebc   :  { %v1603_v26 = vpop.eup %1602 }
 0xebd   :  { %v843_v21 = vmul.f32 %v1603_v26, %v748_v15 }
 0xf20   :  { %v846_v33 = vpop.permute.xlu1 %845 }
 0xf21   :  { %v848_v27 = vmul.f32 %v1603_v26, %v846_v33 }
 0xf23   :  { %850 = vrot.lane.b32.xlu0 %v848_v27, %s1675_s23 }
 0xf95   :  { %v851_v28 = vpop.permute.xlu0 %850 }
 0xf96   :  { %v853_v34 = vadd.f32 %v851_v28, %v843_v21 }
 0xf98   :  { %1604 = vtanh.f32 %v853_v34 }
 0xfa2   :  { %v1605_v35 = vpop.eup %1604 }
 0xfa3   :  { %856 = vrot.lane.b32.xlu1 %v1605_v35, %s1674_s3 }
0x1015   :  { %v857_v36 = vpop.permute.xlu1 %856 }
0x1016   :  { %v859_v37 = vmul.f32 %v1603_v26, %v857_v36  ;;  %v1086_v26 = vld [vmem:[#allocation3 + $0x8] sm:$0x3] }
0x1018   :  { %861 = vrot.lane.b32.xlu0 %v859_v37, %s1675_s23 }
0x108a   :  { %v862_v46 = vpop.permute.xlu0 %861 }
0x108b   :  { %865 = vst.msk [vmem:[#allocation3 + $0xa] sm:$0x3] %vm339_vm3, %v862_v46  ;;  %1465 = vmatmul.mubr.msk.f32.vlgmr.msra.gmra.mrb[6].mxu1 %vm232_vm2, %v862_v46 }
0x108c   :  { %1486 = vmatprep.mubr.msk.f32.mxu1 %vm232_vm2, %v1125_v47  ;;  %1544 = vmatpush3.bf16.msra.mxu1 %v1541_v20 }
0x108d   :  { %1546 = vmatprep.subr.bf16.mxu1 %v1545_v23 }
0x1090   :  { %1548 = vmatpush3.bf16.msra.mxu1 %v1545_v23 }
0x1092   :  { %v1087_v32 = vld [vmem:[#allocation3 + $0xa] sm:$0x3] }
0x1093   :  { %v1126_v33 = vcombine.low %v1086_v26, %v1087_v32 }
0x115e   :  { %v936_v49 = vpop.f32.mrb[6].mxu1 }
0x115f   :  { %v940_v50 = vadd.f32 %v936_v49, %v867_v48  ;;  %v1466_v51 = vpop.f32.mrb[7].mxu1 }
0x1161   :  { %1606 = vtanh.f32 %v940_v50  ;;  %v1327_v53 = vmul.f32 -1.442695, %v940_v50 }
0x1163   :  { %1608 = vpow2.f32 %v1327_v53 }
0x116b   :  { %v1607_v52 = vpop.eup %1606 }
0x116c   :  { %950 = vrot.lane.b32.xlu1 %v1607_v52, %s1674_s3 }
0x116d   :  { %v1609_v54 = vpop.eup %1608 }
0x116e   :  { %v944_v55 = vadd.f32 1.0, %v1609_v54 }
0x1170   :  { %1610 = vrcp.f32 %v944_v55 }
0x117a   :  { %v1611_v56 = vpop.eup %1610 }
0x117b   :  { %v948_v59 = vmul.f32 %v1611_v56, %v853_v34  ;;  %v1134_v34 = vrot.slane %v1126_v33, %v1777_v25 }
0x11de   :  { %v951_v57 = vpop.permute.xlu1 %950 }
0x11df   :  { %v953_v58 = vmul.f32 %v1611_v56, %v951_v57 }
0x11e1   :  { %955 = vrot.lane.b32.xlu0 %v953_v58, %s1675_s23 }
0x1253   :  { %v956_v60 = vpop.permute.xlu0 %955 }
0x1254   :  { %v958_v61 = vadd.f32 %v956_v60, %v948_v59 }
0x1256   :  { %1612 = vtanh.f32 %v958_v61 }
0x1260   :  { %v1613_v62 = vpop.eup %1612 }
0x1261   :  { %961 = vrot.lane.b32.xlu1 %v1613_v62, %s1674_s3 }
0x12d3   :  { %v962_v63 = vpop.permute.xlu1 %961 }
0x12d4   :  { %v964_v0 = vmul.f32 %v1611_v56, %v962_v63 }
0x12d6   :  { %966 = vrot.lane.b32.xlu0 %v964_v0, %s1675_s23 }
0x1348   :  { %v967_v1 = vpop.permute.xlu0 %966 }
0x1349   :  { %970 = vst.msk [vmem:[#allocation3 + $0xc] sm:$0x3] %vm339_vm3, %v967_v1  ;;  %1476 = vmatmul.mubr.msk.f32.vlgmr.msra.gmra.mrb[8].mxu0 %vm232_vm2, %v967_v1 }
0x1350   :  { %v1088_v27 = vld [vmem:[#allocation3 + $0xc] sm:$0x3] }
0x141c   :  { %v1041_v3 = vpop.f32.mrb[8].mxu0 }
0x141d   :  { %v1045_v4 = vadd.f32 %v1041_v3, %v972_v2  ;;  %v1477_v5 = vpop.f32.mrb[9].mxu0 }
0x141f   :  { %1614 = vtanh.f32 %v1045_v4  ;;  %v1329_v7 = vmul.f32 -1.442695, %v1045_v4 }
0x1421   :  { %1616 = vpow2.f32 %v1329_v7 }
0x1429   :  { %v1615_v6 = vpop.eup %1614 }
0x142a   :  { %1055 = vrot.lane.b32.xlu1 %v1615_v6, %s1674_s3 }
0x142b   :  { %v1617_v8 = vpop.eup %1616 }
0x142c   :  { %v1049_v9 = vadd.f32 1.0, %v1617_v8 }
0x142e   :  { %1618 = vrcp.f32 %v1049_v9 }
0x1438   :  { %v1619_v10 = vpop.eup %1618 }
0x1439   :  { %v1053_v13 = vmul.f32 %v1619_v10, %v958_v61 }
0x149c   :  { %v1056_v11 = vpop.permute.xlu1 %1055 }
0x149d   :  { %v1058_v12 = vmul.f32 %v1619_v10, %v1056_v11 }
0x149f   :  { %1060 = vrot.lane.b32.xlu0 %v1058_v12, %s1675_s23 }
0x1511   :  { %v1061_v14 = vpop.permute.xlu0 %1060 }
0x1512   :  { %v1063_v15 = vadd.f32 %v1061_v14, %v1053_v13 }
0x1514   :  { %1620 = vtanh.f32 %v1063_v15 }
0x151e   :  { %v1621_v16 = vpop.eup %1620 }
0x151f   :  { %1066 = vrot.lane.b32.xlu1 %v1621_v16, %s1674_s3 }
0x1523   :  { %1078 = vrot.lane.b32.xlu1 %v1063_v15, %s1676_s7 }
0x1591   :  { %v1067_v24 = vpop.permute.xlu1 %1066 }
0x1592   :  { %v1069_v29 = vmul.f32 %v1619_v10, %v1067_v24 }
0x1594   :  { %1071 = vrot.lane.b32.xlu0 %v1069_v29, %s1675_s23 }
0x1595   :  { %v1079_v30 = vpop.permute.xlu1 %1078 }
0x1596   :  { %1081 = vst.msk [vmem:[#allocation6] sm:$0x3] %vm339_vm3, %v1079_v30 }
0x1606   :  { %v1072_v31 = vpop.permute.xlu0 %1071 }
0x1607   :  { %1075 = vst.msk [vmem:[#allocation3 + $0xe] sm:$0x3] %vm339_vm3, %v1072_v31  ;;  %1076 = vst.msk [vmem:[#allocation4] sm:$0x3] %vm339_vm3, %v1072_v31 }
0x160e   :  { %v1089_v21 = vld [vmem:[#allocation3 + $0xe] sm:$0x3] }
0x160f   :  { %v1127_v28 = vcombine.low %v1088_v27, %v1089_v21 }
0x1611   :  { %v1141_v35 = vrot.slane %v1127_v28, %v1777_v25 }
0x1613   :  { %v1142_v36 = vcombine.low %v1134_v34, %v1141_v35 }
0x1615   :  { %1487 = vmatmul.mubr.msk.f32.vlgmr.msra.gmra.mrb[8].mxu1 %vm232_vm2, %v1142_v36 }
0x1616   :  { %1633 = shalt.err (!%p1630_p4)
}
0x1617   :  { %s1634_s17 = scalar_lea.hbm %s1988_s9, 32 }
0x1618   :  { %p1635_p5 = scmp.ne.s32.totalorder %s1988_s9, %s1634_s17  ;;  %p1638_p6 = scmp.lt.u32.totalorder %s1634_s17, %s1988_s9 }
0x161a   :  { %p1640_p7 = pnand %p1638_p6, %p1635_p5 }
0x161c   :  { %1643 = shalt.err (!%p1640_p7)
}
0x161d   :  { %1286 = dma.vmem_to_hbm [thread:$0]  %s1284_s11, 32, %s1988_s9, [#allocation5]  }
0x161e   :  { %s1644_s3 = scalar_lea.vmem %s1294_s13, 32  ;;  %p1649_p9 = scmp.lt.s32.totalorder %s1294_s13, %s1294_s13 }
0x161f   :  { %p1645_p8 = scmp.ne.s32.totalorder %s1294_s13, %s1644_s3  ;;  %p1650_p10 = scmp.lt.s32.totalorder %s1644_s3, %s1644_s3 }
0x1621   :  { %p1651_p11 = por %p1650_p10, %p1649_p9 }
0x1623   :  { %p1652_p12 = pnand %p1651_p11, %p1645_p8 }
0x1625   :  { %1655 = shalt.err (!%p1652_p12)
}
0x1626   :  { %s1656_s23 = scalar_lea.hbm %s1989_s10, 32 }
0x1627   :  { %p1657_p13 = scmp.ne.s32.totalorder %s1989_s10, %s1656_s23  ;;  %p1660_p0 = scmp.lt.u32.totalorder %s1656_s23, %s1989_s10 }
0x1629   :  { %p1662_p1 = pnand %p1660_p0, %p1657_p13 }
0x162b   :  { %1665 = shalt.err (!%p1662_p1)
}
0x162c   :  { %1296 = dma.vmem_to_hbm [thread:$0]  %s1294_s13, 32, %s1989_s10, [#allocation7]   ;;  %v1330_v37 = vld [vmem:[%s1984_s5] ss:$0 sm:$0xff]  ;;  %vm1266_vm4 = vcmask 58368  }
0x16e8   :  { %v1488_v38 = vpop.f32.mrb[8].mxu1 }
0x16e9   :  { %v1219_v39 = vadd.f32 %v1488_v38, %v1330_v37  ;;  %v1213_v40 = vpop.f32.mrb[9].mxu1 }
0x16ea   :  { %v1214_v41 = vadd.f32 %v1330_v37, %v1213_v40 }
0x16eb   :  { %v1241_v42 = vcombine.high %v1219_v39, %v1219_v39  ;;  %v1248_v43 = vrot.slane %v1219_v39, %v1777_v25 }
0x16ec   :  { %v1224_v44 = vcombine.high %v1214_v41, %v1214_v41  ;;  %v1231_v45 = vrot.slane %v1214_v41, %v1777_v25 }
0x16ed   :  { %v1255_v46 = vrot.slane %v1241_v42, %v1777_v25  ;;  %v1256_v47 = vcombine.high %v1248_v43, %v1248_v43  ;;  %1271 = vst.msk [vmem:[%s1987_s8 + $0x8] sm:$0x3] %vm1266_vm4, %v1248_v43 }
0x16ee   :  { %v1238_v48 = vrot.slane %v1224_v44, %v1777_v25  ;;  %v1239_v49 = vcombine.high %v1231_v45, %v1231_v45  ;;  %1267 = vst.msk [vmem:[%s1987_s8] sm:$0x3] %vm1266_vm4, %v1231_v45 }
0x16ef   :  { %v1257_v50 = vcombine.high %v1255_v46, %v1255_v46  ;;  %1272 = vst.msk [vmem:[%s1987_s8 + $0xa] sm:$0x3] %vm1266_vm4, %v1256_v47  ;;  %1273 = vst.msk [vmem:[%s1987_s8 + $0xc] sm:$0x3] %vm1266_vm4, %v1255_v46 }
0x16f0   :  { %v1240_v51 = vcombine.high %v1238_v48, %v1238_v48  ;;  %1268 = vst.msk [vmem:[%s1987_s8 + $0x2] sm:$0x3] %vm1266_vm4, %v1239_v49  ;;  %1269 = vst.msk [vmem:[%s1987_s8 + $0x4] sm:$0x3] %vm1266_vm4, %v1238_v48 }
0x16f1   :  { %1274 = vst.msk [vmem:[%s1987_s8 + $0xe] sm:$0x3] %vm1266_vm4, %v1257_v50 }
0x16f2   :  { %1270 = vst.msk [vmem:[%s1987_s8 + $0x6] sm:$0x3] %vm1266_vm4, %v1240_v51 }
0x16f3   :  { %1666 = dma.done.wait [#allocation5], 32  }
0x16f4   :  { %1667 = vsyncadd [#allocation5], 4294967264 }
0x16f5   :  { %1668 = dma.done.wait [#allocation7], 32  }
0x16f6   :  { %1669 = vsyncadd [#allocation7], 4294967264 }
0x16f7   :  { %1305 = vsyncpa [#allocation5], 1 }
0x16f8   :  { %1306 = vsyncpa [#allocation7], 1 }

</bundles_post_ra>
